<compile_context>
chip_gen: v7x
topology: tpu7x:2x2x1
jax: 0.10.0
libtpu: 0.0.40
codegen_flags: <defaults>
</compile_context>

<pallas_src>
import functools

import jax
import jax.numpy as jnp
from jax.experimental import pallas as pl
from jax.experimental.pallas import tpu as pltpu


def _round_up(x, m):
    return ((x + m - 1) // m) * m


def _camera_kernel(cam_ref, state_ref, action_ref, const_ref,
                   new_state_ref, reward_ref, coef_ref, *, mask_cols):
    ni = pl.program_id(1)
    n_tile = const_ref.shape[1]

    # ---- per-batch setup: only at the first point tile of each batch tile ----
    @pl.when(ni == 0)
    def _setup():
        new_state = state_ref[...] + action_ref[...]            # (b_tile, 6)
        new_state_ref[...] = new_state

        tx = new_state[:, 0:1]
        ty = new_state[:, 1:2]
        tz = new_state[:, 2:3]

        ang = new_state[:, 3:6]                                  # (b_tile, 3)
        cs = jnp.cos(ang)                                        # 2 EUP calls, not 6
        sn = jnp.sin(ang)
        ca, cb, cc = cs[:, 0:1], cs[:, 1:2], cs[:, 2:3]
        sa, sb, sc = sn[:, 0:1], sn[:, 1:2], sn[:, 2:3]

        # rmat = Rz(a) @ Rx(b) @ Ry(c)  (closed form, matches _compute_rmat)
        r00 = ca * cc - sa * sb * sc
        r01 = -sa * cb
        r02 = ca * sc + sa * sb * cc
        r10 = sa * cc + ca * sb * sc
        r11 = ca * cb
        r12 = sa * sc - ca * sb * cc
        r20 = -cb * sc
        r21 = sb
        r22 = cb * cc

        # camera intrinsics (scalars from SMEM)
        c00 = cam_ref[0, 0]; c01 = cam_ref[0, 1]; c02 = cam_ref[0, 2]
        c10 = cam_ref[1, 0]; c11 = cam_ref[1, 1]; c12 = cam_ref[1, 2]
        c20 = cam_ref[2, 0]; c21 = cam_ref[2, 1]; c22 = cam_ref[2, 2]

        # fold intrinsics into extrinsics: M = C @ R, t' = C @ t (per batch row)
        coefs = (
            c00 * r00 + c01 * r10 + c02 * r20,   # m00
            c00 * r01 + c01 * r11 + c02 * r21,   # m01
            c00 * r02 + c01 * r12 + c02 * r22,   # m02
            c00 * tx + c01 * ty + c02 * tz,      # t'0
            c10 * r00 + c11 * r10 + c12 * r20,   # m10
            c10 * r01 + c11 * r11 + c12 * r21,   # m11
            c10 * r02 + c11 * r12 + c12 * r22,   # m12
            c10 * tx + c11 * ty + c12 * tz,      # t'1
            c20 * r00 + c21 * r10 + c22 * r20,   # m20
            c20 * r01 + c21 * r11 + c22 * r21,   # m21
            c20 * r02 + c21 * r12 + c22 * r22,   # m22
            c20 * tx + c21 * ty + c22 * tz,      # t'2
        )
        # Setup-only (once per batch tile): 12 single-column stores are
        # negligible next to the streaming loop; a packed minor-dim concat
        # store gains nothing measurable here.
        for idx, val in enumerate(coefs):
            coef_ref[:, idx:idx + 1] = val

        reward_ref[...] = jnp.zeros_like(reward_ref)

    # ---- per-point streaming work (pure VPU/EUP) -----------------------------
    coef = coef_ref[...]                                         # (b_tile, 12)
    m00 = coef[:, 0:1];  m01 = coef[:, 1:2];  m02 = coef[:, 2:3];  t0 = coef[:, 3:4]
    m10 = coef[:, 4:5];  m11 = coef[:, 5:6];  m12 = coef[:, 6:7];  t1 = coef[:, 7:8]
    m20 = coef[:, 8:9];  m21 = coef[:, 9:10]; m22 = coef[:, 10:11]; t2 = coef[:, 11:12]

    px = const_ref[0:1, :]                                       # (1, n_tile)
    py = const_ref[1:2, :]
    pz = const_ref[2:3, :]
    tu = const_ref[3:4, :]
    tv = const_ref[4:5, :]

    p0 = m00 * px + m01 * py + m02 * pz + t0                     # (b_tile, n_tile)
    p1 = m10 * px + m11 * py + m12 * pz + t1
    p2 = m20 * px + m21 * py + m22 * pz + t2

    # TODO(synk): no guard for p2 ~ 0 (point at/behind camera plane) — matches
    # the reference module, which also produces inf/nan there.
    inv = pl.reciprocal(p2, approx=True)                         # EUP slot
    du = tu - p0 * inv
    dv = tv - p1 * inv
    dist = jnp.sqrt(du * du + dv * dv)                           # (b_tile, n_tile)

    def lane_fold(x):
        # fold lane-chunks of width 128 with VPU adds → (b_tile, 128)
        acc = x[:, 0:128]
        for c in range(1, n_tile // 128):
            acc = acc + x[:, c * 128:(c + 1) * 128]
        return acc

    if mask_cols:
        # padded lanes only exist in the LAST point tile; mask is gated there
        last = pl.num_programs(1) - 1

        @pl.when(ni != last)
        def _acc_full():
            reward_ref[...] += lane_fold(dist)

        @pl.when(ni == last)
        def _acc_masked():
            valid = const_ref[5:6, :]                            # 0/1 row, free in const
            reward_ref[...] += lane_fold(jnp.where(valid != 0.0, dist, 0.0))
    else:
        reward_ref[...] += lane_fold(dist)


def make_camera_transition(camera_mat, target_points, points_env, *, n_tile=4096):
    """Module init: precompute constants, return jitted forward(state, action)."""
    num_n = points_env.shape[0]
    n_tile = min(_round_up(n_tile, 128), _round_up(num_n, 128))
    n_pad = _round_up(num_n, n_tile)
    nn = n_pad // n_tile
    mask_cols = (n_pad != num_n)

    # Merged module constant, built ONCE: rows 0-2 points^T, 3-4 targets^T,
    # 5 valid-lane mask, 6-7 zero padding (sublane-pad to 8 would happen anyway,
    # so merging halves the per-step DMA descriptors vs two inputs).
    const = jnp.zeros((8, n_pad), jnp.float32)
    const = const.at[0:3, :num_n].set(points_env.astype(jnp.float32).T)
    const = const.at[3:5, :num_n].set(target_points.astype(jnp.float32).T)
    const = const.at[5, :num_n].set(1.0)

    cam = camera_mat.astype(jnp.float32)                         # (3, 3) -> SMEM

    @jax.jit
    def forward(state, action):
        num_b = state.shape[0]
        b_pad8 = _round_up(num_b, 8)
        if b_pad8 >= 16:
            # aim for >= 2 batch tiles so the "parallel" axis feeds both v7x cores
            b_tile = min(128, _round_up(b_pad8 // 2, 8))
        else:
            b_tile = b_pad8
        b_pad = _round_up(num_b, b_tile)
        nb = b_pad // b_tile

        state_p = jnp.pad(state.astype(jnp.float32), ((0, b_pad - num_b), (0, 0)))
        action_p = jnp.pad(action.astype(jnp.float32), ((0, b_pad - num_b), (0, 0)))

        kernel = functools.partial(_camera_kernel, mask_cols=mask_cols)

        new_state_p, reward_part = pl.pallas_call(
            kernel,
            grid=(nb, nn),
            out_shape=(
                jax.ShapeDtypeStruct((b_pad, 6), jnp.float32),
                jax.ShapeDtypeStruct((b_pad, 128), jnp.float32),
            ),
            in_specs=[
                pl.BlockSpec(memory_space=pltpu.MemorySpace.SMEM),      # camera_mat
                pl.BlockSpec((b_tile, 6), lambda bi, ni: (bi, 0)),       # state
                pl.BlockSpec((b_tile, 6), lambda bi, ni: (bi, 0)),       # action
                pl.BlockSpec((8, n_tile), lambda bi, ni: (0, ni)),       # merged const
            ],
            out_specs=(
                pl.BlockSpec((b_tile, 6), lambda bi, ni: (bi, 0)),       # new_state
                pl.BlockSpec((b_tile, 128), lambda bi, ni: (bi, 0)),     # reward partial
            ),
            scratch_shapes=[pltpu.VMEM((b_tile, 12), jnp.float32)],      # folded C@[R|t]
            compiler_params=pltpu.CompilerParams(
                dimension_semantics=("parallel", "arbitrary"),
                # headroom for n_tile up to ~8K even on v5e's 16 MiB default
                vmem_limit_bytes=32 * 1024 * 1024),
        )(cam, state_p, action_p, const)

        # Padded batch rows can hold inf/nan (t'2 == 0) — slice them out BEFORE
        # the reduction instead of masking inside the kernel.
        return new_state_p[:num_b], -jnp.sum(reward_part[:num_b])

    return forward


def _reference(state, action, camera_mat, target_points, points_env):
    """Pure-JAX transcription of the PyTorch forward, for validation."""
    s = state + action
    tvec = s[:, :3]
    ang = s[:, 3:]
    ca, sa = jnp.cos(ang[:, 0]), jnp.sin(ang[:, 0])
    cb, sb = jnp.cos(ang[:, 1]), jnp.sin(ang[:, 1])
    cc, sc = jnp.cos(ang[:, 2]), jnp.sin(ang[:, 2])
    z = jnp.zeros_like(ca)
    o = jnp.ones_like(ca)
    first = jnp.stack([jnp.stack([ca, -sa, z], -1),
                       jnp.stack([sa, ca, z], -1),
                       jnp.stack([z, z, o], -1)], -2)
    second = jnp.stack([jnp.stack([o, z, z], -1),
                        jnp.stack([z, cb, -sb], -1),
                        jnp.stack([z, sb, cb], -1)], -2)
    third = jnp.stack([jnp.stack([cc, z, sc], -1),
                       jnp.stack([z, o, z], -1),
                       jnp.stack([-sc, z, cc], -1)], -2)
    rmat = first @ second @ third
    rt = jnp.concatenate([rmat, tvec[..., None]], axis=2)             # (B,3,4)
    coords = jnp.concatenate(
        [points_env, jnp.ones((points_env.shape[0], 1))], axis=1).T   # (4,N)
    proj = jnp.einsum('ij,bjk,kn->bin', camera_mat, rt, coords)       # (B,3,N)
    proj = proj / proj[:, -1:, :]
    proj = jnp.swapaxes(proj[:, :2, :], 1, 2)                         # (B,N,2)
    reward = jnp.sqrt(((target_points[None] - proj) ** 2).sum(-1)).sum()
    return s, -reward


if __name__ == "__main__":
    B, N = 5, 200   # exercises batch padding, lane padding, and the lane fold
    key = jax.random.PRNGKey(0)
    k1, k2, k3, k4, k5 = jax.random.split(key, 5)

    # deterministic "parameters" (module __init__ args)
    camera_mat = jnp.array([[500.0, 0.0, 320.0],
                            [0.0, 500.0, 240.0],
                            [0.0, 0.0, 1.0]], dtype=jnp.float32)
    points_env = jax.random.uniform(k1, (N, 3), minval=-1.0, maxval=1.0,
                                    dtype=jnp.float32)
    target_points = jax.random.uniform(k2, (N, 2), minval=0.0, maxval=640.0,
                                       dtype=jnp.float32)

    # inputs: camera placed ~5 units in front of the points along z so zc != 0
    state = jnp.concatenate(
        [jax.random.uniform(k3, (B, 3), minval=-0.5, maxval=0.5)
         + jnp.array([0.0, 0.0, 5.0]),
         jax.random.uniform(k4, (B, 3), minval=-0.2, maxval=0.2)],
        axis=1).astype(jnp.float32)
    action = (0.01 * jax.random.normal(k5, (B, 6))).astype(jnp.float32)

    forward = make_camera_transition(camera_mat, target_points, points_env)
    new_state, neg_reward = forward(state, action)
    jax.block_until_ready((new_state, neg_reward))

    ref_state, ref_neg_reward = _reference(
        state, action, camera_mat, target_points, points_env)
    assert jnp.allclose(new_state, ref_state, atol=1e-5, rtol=1e-5)
    # loose reward tolerance: pl.reciprocal(approx=True) has ~2^-12 rel error
    assert jnp.allclose(neg_reward, ref_neg_reward, atol=1.0, rtol=2e-3)

    print("KERNEL_OK")
</pallas_src>

<mosaic_0001>
module attributes {stable_mosaic.version = 11 : i64} {
  func.func @_camera_kernel(%arg0: i32, %arg1: i32, %arg2: memref<3x3xf32, #tpu.memory_space<smem>>, %arg3: memref<8x6xf32, #tpu.memory_space<vmem>>, %arg4: memref<8x6xf32, #tpu.memory_space<vmem>>, %arg5: memref<8x256xf32, #tpu.memory_space<vmem>>, %arg6: memref<8x6xf32, #tpu.memory_space<vmem>>, %arg7: memref<8x128xf32, #tpu.memory_space<vmem>>, %arg8: memref<8x12xf32, #tpu.memory_space<vmem>>) attributes {dimension_semantics = [#tpu.dimension_semantics<parallel>, #tpu.dimension_semantics<arbitrary>], iteration_bounds = array<i64: 1, 1>, scalar_prefetch = 0 : i64, scratch_operands = 1 : i64, tpu.core_type = #tpu.core_type<tc>, window_params = [{transform_indices = @transform_0, window_bounds = array<i64: 3, 3>}, {transform_indices = @transform_1, window_bounds = array<i64: 8, 6>}, {transform_indices = @transform_2, window_bounds = array<i64: 8, 6>}, {transform_indices = @transform_3, window_bounds = array<i64: 8, 256>}, {transform_indices = @transform_4, window_bounds = array<i64: 8, 6>}, {transform_indices = @transform_5, window_bounds = array<i64: 8, 128>}]} {
    %c0_i32 = arith.constant 0 : i32
    %0 = arith.cmpi eq, %arg1, %c0_i32 : i32
    %1 = arith.extui %0 : i1 to i32
    %c0_i32_0 = arith.constant 0 : i32
    %2 = arith.cmpi ne, %1, %c0_i32_0 : i32
    scf.if %2 {
      %c0_12 = arith.constant 0 : index
      %c0_13 = arith.constant 0 : index
      %77 = vector.load %arg3[%c0_12, %c0_13] : memref<8x6xf32, #tpu.memory_space<vmem>>, vector<8x6xf32>
      %c0_14 = arith.constant 0 : index
      %c0_15 = arith.constant 0 : index
      %78 = vector.load %arg4[%c0_14, %c0_15] : memref<8x6xf32, #tpu.memory_space<vmem>>, vector<8x6xf32>
      %79 = arith.addf %77, %78 : vector<8x6xf32>
      %c0_16 = arith.constant 0 : index
      %c0_17 = arith.constant 0 : index
      %80 = vector.load %arg6[%c0_16, %c0_17] : memref<8x6xf32, #tpu.memory_space<vmem>>, vector<8x6xf32>
      tpu.vector_store %arg6[%c0_16, %c0_17], %79 {strides = array<i32>} : memref<8x6xf32, #tpu.memory_space<vmem>>, vector<8x6xf32>,
      %81 = vector.extract_strided_slice %79 {offsets = [0, 0], sizes = [8, 1], strides = [1, 1]} : vector<8x6xf32> to vector<8x1xf32>
      %82 = vector.extract_strided_slice %79 {offsets = [0, 1], sizes = [8, 1], strides = [1, 1]} : vector<8x6xf32> to vector<8x1xf32>
      %83 = vector.extract_strided_slice %79 {offsets = [0, 2], sizes = [8, 1], strides = [1, 1]} : vector<8x6xf32> to vector<8x1xf32>
      %84 = vector.extract_strided_slice %79 {offsets = [0, 3], sizes = [8, 3], strides = [1, 1]} : vector<8x6xf32> to vector<8x3xf32>
      %85 = math.cos %84 : vector<8x3xf32>
      %86 = math.sin %84 : vector<8x3xf32>
      %87 = vector.extract_strided_slice %85 {offsets = [0, 0], sizes = [8, 1], strides = [1, 1]} : vector<8x3xf32> to vector<8x1xf32>
      %88 = vector.extract_strided_slice %85 {offsets = [0, 1], sizes = [8, 1], strides = [1, 1]} : vector<8x3xf32> to vector<8x1xf32>
      %89 = vector.extract_strided_slice %85 {offsets = [0, 2], sizes = [8, 1], strides = [1, 1]} : vector<8x3xf32> to vector<8x1xf32>
      %90 = vector.extract_strided_slice %86 {offsets = [0, 0], sizes = [8, 1], strides = [1, 1]} : vector<8x3xf32> to vector<8x1xf32>
      %91 = vector.extract_strided_slice %86 {offsets = [0, 1], sizes = [8, 1], strides = [1, 1]} : vector<8x3xf32> to vector<8x1xf32>
      %92 = vector.extract_strided_slice %86 {offsets = [0, 2], sizes = [8, 1], strides = [1, 1]} : vector<8x3xf32> to vector<8x1xf32>
      %93 = arith.mulf %87, %89 : vector<8x1xf32>
      %94 = arith.mulf %90, %91 : vector<8x1xf32>
      %95 = arith.mulf %94, %92 : vector<8x1xf32>
      %96 = arith.subf %93, %95 : vector<8x1xf32>
      %cst = arith.constant 0.000000e+00 : f32
      %97 = vector.broadcast %cst : f32 to vector<8x1xf32>
      %98 = arith.subf %97, %90 : vector<8x1xf32>
      %99 = arith.mulf %98, %88 : vector<8x1xf32>
      %100 = arith.mulf %87, %92 : vector<8x1xf32>
      %101 = arith.mulf %90, %91 : vector<8x1xf32>
      %102 = arith.mulf %101, %89 : vector<8x1xf32>
      %103 = arith.addf %100, %102 : vector<8x1xf32>
      %104 = arith.mulf %90, %89 : vector<8x1xf32>
      %105 = arith.mulf %87, %91 : vector<8x1xf32>
      %106 = arith.mulf %105, %92 : vector<8x1xf32>
      %107 = arith.addf %104, %106 : vector<8x1xf32>
      %108 = arith.mulf %87, %88 : vector<8x1xf32>
      %109 = arith.mulf %90, %92 : vector<8x1xf32>
      %110 = arith.mulf %87, %91 : vector<8x1xf32>
      %111 = arith.mulf %110, %89 : vector<8x1xf32>
      %112 = arith.subf %109, %111 : vector<8x1xf32>
      %cst_18 = arith.constant 0.000000e+00 : f32
      %113 = vector.broadcast %cst_18 : f32 to vector<8x1xf32>
      %114 = arith.subf %113, %88 : vector<8x1xf32>
      %115 = arith.mulf %114, %92 : vector<8x1xf32>
      %116 = arith.mulf %88, %89 : vector<8x1xf32>
      %c0_19 = arith.constant 0 : index
      %c0_20 = arith.constant 0 : index
      %117 = memref.load %arg2[%c0_19, %c0_20] : memref<3x3xf32, #tpu.memory_space<smem>>
      %c0_21 = arith.constant 0 : index
      %c1_22 = arith.constant 1 : index
      %118 = memref.load %arg2[%c0_21, %c1_22] : memref<3x3xf32, #tpu.memory_space<smem>>
      %c0_23 = arith.constant 0 : index
      %c2_24 = arith.constant 2 : index
      %119 = memref.load %arg2[%c0_23, %c2_24] : memref<3x3xf32, #tpu.memory_space<smem>>
      %c1_25 = arith.constant 1 : index
      %c0_26 = arith.constant 0 : index
      %120 = memref.load %arg2[%c1_25, %c0_26] : memref<3x3xf32, #tpu.memory_space<smem>>
      %c1_27 = arith.constant 1 : index
      %c1_28 = arith.constant 1 : index
      %121 = memref.load %arg2[%c1_27, %c1_28] : memref<3x3xf32, #tpu.memory_space<smem>>
      %c1_29 = arith.constant 1 : index
      %c2_30 = arith.constant 2 : index
      %122 = memref.load %arg2[%c1_29, %c2_30] : memref<3x3xf32, #tpu.memory_space<smem>>
      %c2_31 = arith.constant 2 : index
      %c0_32 = arith.constant 0 : index
      %123 = memref.load %arg2[%c2_31, %c0_32] : memref<3x3xf32, #tpu.memory_space<smem>>
      %c2_33 = arith.constant 2 : index
      %c1_34 = arith.constant 1 : index
      %124 = memref.load %arg2[%c2_33, %c1_34] : memref<3x3xf32, #tpu.memory_space<smem>>
      %c2_35 = arith.constant 2 : index
      %c2_36 = arith.constant 2 : index
      %125 = memref.load %arg2[%c2_35, %c2_36] : memref<3x3xf32, #tpu.memory_space<smem>>
      %126 = vector.broadcast %117 : f32 to vector<8x1xf32>
      %127 = arith.mulf %126, %96 : vector<8x1xf32>
      %128 = vector.broadcast %118 : f32 to vector<8x1xf32>
      %129 = arith.mulf %128, %107 : vector<8x1xf32>
      %130 = arith.addf %127, %129 : vector<8x1xf32>
      %131 = vector.broadcast %119 : f32 to vector<8x1xf32>
      %132 = arith.mulf %131, %115 : vector<8x1xf32>
      %133 = arith.addf %130, %132 : vector<8x1xf32>
      %134 = vector.broadcast %117 : f32 to vector<8x1xf32>
      %135 = arith.mulf %134, %99 : vector<8x1xf32>
      %136 = vector.broadcast %118 : f32 to vector<8x1xf32>
      %137 = arith.mulf %136, %108 : vector<8x1xf32>
      %138 = arith.addf %135, %137 : vector<8x1xf32>
      %139 = vector.broadcast %119 : f32 to vector<8x1xf32>
      %140 = arith.mulf %139, %91 : vector<8x1xf32>
      %141 = arith.addf %138, %140 : vector<8x1xf32>
      %142 = vector.broadcast %117 : f32 to vector<8x1xf32>
      %143 = arith.mulf %142, %103 : vector<8x1xf32>
      %144 = vector.broadcast %118 : f32 to vector<8x1xf32>
      %145 = arith.mulf %144, %112 : vector<8x1xf32>
      %146 = arith.addf %143, %145 : vector<8x1xf32>
      %147 = vector.broadcast %119 : f32 to vector<8x1xf32>
      %148 = arith.mulf %147, %116 : vector<8x1xf32>
      %149 = arith.addf %146, %148 : vector<8x1xf32>
      %150 = vector.broadcast %117 : f32 to vector<8x1xf32>
      %151 = arith.mulf %150, %81 : vector<8x1xf32>
      %152 = vector.broadcast %118 : f32 to vector<8x1xf32>
      %153 = arith.mulf %152, %82 : vector<8x1xf32>
      %154 = arith.addf %151, %153 : vector<8x1xf32>
      %155 = vector.broadcast %119 : f32 to vector<8x1xf32>
      %156 = arith.mulf %155, %83 : vector<8x1xf32>
      %157 = arith.addf %154, %156 : vector<8x1xf32>
      %158 = vector.broadcast %120 : f32 to vector<8x1xf32>
      %159 = arith.mulf %158, %96 : vector<8x1xf32>
      %160 = vector.broadcast %121 : f32 to vector<8x1xf32>
      %161 = arith.mulf %160, %107 : vector<8x1xf32>
      %162 = arith.addf %159, %161 : vector<8x1xf32>
      %163 = vector.broadcast %122 : f32 to vector<8x1xf32>
      %164 = arith.mulf %163, %115 : vector<8x1xf32>
      %165 = arith.addf %162, %164 : vector<8x1xf32>
      %166 = vector.broadcast %120 : f32 to vector<8x1xf32>
      %167 = arith.mulf %166, %99 : vector<8x1xf32>
      %168 = vector.broadcast %121 : f32 to vector<8x1xf32>
      %169 = arith.mulf %168, %108 : vector<8x1xf32>
      %170 = arith.addf %167, %169 : vector<8x1xf32>
      %171 = vector.broadcast %122 : f32 to vector<8x1xf32>
      %172 = arith.mulf %171, %91 : vector<8x1xf32>
      %173 = arith.addf %170, %172 : vector<8x1xf32>
      %174 = vector.broadcast %120 : f32 to vector<8x1xf32>
      %175 = arith.mulf %174, %103 : vector<8x1xf32>
      %176 = vector.broadcast %121 : f32 to vector<8x1xf32>
      %177 = arith.mulf %176, %112 : vector<8x1xf32>
      %178 = arith.addf %175, %177 : vector<8x1xf32>
      %179 = vector.broadcast %122 : f32 to vector<8x1xf32>
      %180 = arith.mulf %179, %116 : vector<8x1xf32>
      %181 = arith.addf %178, %180 : vector<8x1xf32>
      %182 = vector.broadcast %120 : f32 to vector<8x1xf32>
      %183 = arith.mulf %182, %81 : vector<8x1xf32>
      %184 = vector.broadcast %121 : f32 to vector<8x1xf32>
      %185 = arith.mulf %184, %82 : vector<8x1xf32>
      %186 = arith.addf %183, %185 : vector<8x1xf32>
      %187 = vector.broadcast %122 : f32 to vector<8x1xf32>
      %188 = arith.mulf %187, %83 : vector<8x1xf32>
      %189 = arith.addf %186, %188 : vector<8x1xf32>
      %190 = vector.broadcast %123 : f32 to vector<8x1xf32>
      %191 = arith.mulf %190, %96 : vector<8x1xf32>
      %192 = vector.broadcast %124 : f32 to vector<8x1xf32>
      %193 = arith.mulf %192, %107 : vector<8x1xf32>
      %194 = arith.addf %191, %193 : vector<8x1xf32>
      %195 = vector.broadcast %125 : f32 to vector<8x1xf32>
      %196 = arith.mulf %195, %115 : vector<8x1xf32>
      %197 = arith.addf %194, %196 : vector<8x1xf32>
      %198 = vector.broadcast %123 : f32 to vector<8x1xf32>
      %199 = arith.mulf %198, %99 : vector<8x1xf32>
      %200 = vector.broadcast %124 : f32 to vector<8x1xf32>
      %201 = arith.mulf %200, %108 : vector<8x1xf32>
      %202 = arith.addf %199, %201 : vector<8x1xf32>
      %203 = vector.broadcast %125 : f32 to vector<8x1xf32>
      %204 = arith.mulf %203, %91 : vector<8x1xf32>
      %205 = arith.addf %202, %204 : vector<8x1xf32>
      %206 = vector.broadcast %123 : f32 to vector<8x1xf32>
      %207 = arith.mulf %206, %103 : vector<8x1xf32>
      %208 = vector.broadcast %124 : f32 to vector<8x1xf32>
      %209 = arith.mulf %208, %112 : vector<8x1xf32>
      %210 = arith.addf %207, %209 : vector<8x1xf32>
      %211 = vector.broadcast %125 : f32 to vector<8x1xf32>
      %212 = arith.mulf %211, %116 : vector<8x1xf32>
      %213 = arith.addf %210, %212 : vector<8x1xf32>
      %214 = vector.broadcast %123 : f32 to vector<8x1xf32>
      %215 = arith.mulf %214, %81 : vector<8x1xf32>
      %216 = vector.broadcast %124 : f32 to vector<8x1xf32>
      %217 = arith.mulf %216, %82 : vector<8x1xf32>
      %218 = arith.addf %215, %217 : vector<8x1xf32>
      %219 = vector.broadcast %125 : f32 to vector<8x1xf32>
      %220 = arith.mulf %219, %83 : vector<8x1xf32>
      %221 = arith.addf %218, %220 : vector<8x1xf32>
      %c0_37 = arith.constant 0 : index
      %c0_38 = arith.constant 0 : index
      %222 = vector.load %arg8[%c0_37, %c0_38] : memref<8x12xf32, #tpu.memory_space<vmem>>, vector<8x1xf32>
      tpu.vector_store %arg8[%c0_37, %c0_38], %133 {strides = array<i32>} : memref<8x12xf32, #tpu.memory_space<vmem>>, vector<8x1xf32>,
      %c0_39 = arith.constant 0 : index
      %c1_40 = arith.constant 1 : index
      %223 = vector.load %arg8[%c0_39, %c1_40] : memref<8x12xf32, #tpu.memory_space<vmem>>, vector<8x1xf32>
      tpu.vector_store %arg8[%c0_39, %c1_40], %141 {strides = array<i32>} : memref<8x12xf32, #tpu.memory_space<vmem>>, vector<8x1xf32>,
      %c0_41 = arith.constant 0 : index
      %c2_42 = arith.constant 2 : index
      %224 = vector.load %arg8[%c0_41, %c2_42] : memref<8x12xf32, #tpu.memory_space<vmem>>, vector<8x1xf32>
      tpu.vector_store %arg8[%c0_41, %c2_42], %149 {strides = array<i32>} : memref<8x12xf32, #tpu.memory_space<vmem>>, vector<8x1xf32>,
      %c0_43 = arith.constant 0 : index
      %c3_44 = arith.constant 3 : index
      %225 = vector.load %arg8[%c0_43, %c3_44] : memref<8x12xf32, #tpu.memory_space<vmem>>, vector<8x1xf32>
      tpu.vector_store %arg8[%c0_43, %c3_44], %157 {strides = array<i32>} : memref<8x12xf32, #tpu.memory_space<vmem>>, vector<8x1xf32>,
      %c0_45 = arith.constant 0 : index
      %c4_46 = arith.constant 4 : index
      %226 = vector.load %arg8[%c0_45, %c4_46] : memref<8x12xf32, #tpu.memory_space<vmem>>, vector<8x1xf32>
      tpu.vector_store %arg8[%c0_45, %c4_46], %165 {strides = array<i32>} : memref<8x12xf32, #tpu.memory_space<vmem>>, vector<8x1xf32>,
      %c0_47 = arith.constant 0 : index
      %c5 = arith.constant 5 : index
      %227 = vector.load %arg8[%c0_47, %c5] : memref<8x12xf32, #tpu.memory_space<vmem>>, vector<8x1xf32>
      tpu.vector_store %arg8[%c0_47, %c5], %173 {strides = array<i32>} : memref<8x12xf32, #tpu.memory_space<vmem>>, vector<8x1xf32>,
      %c0_48 = arith.constant 0 : index
      %c6 = arith.constant 6 : index
      %228 = vector.load %arg8[%c0_48, %c6] : memref<8x12xf32, #tpu.memory_space<vmem>>, vector<8x1xf32>
      tpu.vector_store %arg8[%c0_48, %c6], %181 {strides = array<i32>} : memref<8x12xf32, #tpu.memory_space<vmem>>, vector<8x1xf32>,
      %c0_49 = arith.constant 0 : index
      %c7 = arith.constant 7 : index
      %229 = vector.load %arg8[%c0_49, %c7] : memref<8x12xf32, #tpu.memory_space<vmem>>, vector<8x1xf32>
      tpu.vector_store %arg8[%c0_49, %c7], %189 {strides = array<i32>} : memref<8x12xf32, #tpu.memory_space<vmem>>, vector<8x1xf32>,
      %c0_50 = arith.constant 0 : index
      %c8 = arith.constant 8 : index
      %230 = vector.load %arg8[%c0_50, %c8] : memref<8x12xf32, #tpu.memory_space<vmem>>, vector<8x1xf32>
      tpu.vector_store %arg8[%c0_50, %c8], %197 {strides = array<i32>} : memref<8x12xf32, #tpu.memory_space<vmem>>, vector<8x1xf32>,
      %c0_51 = arith.constant 0 : index
      %c9 = arith.constant 9 : index
      %231 = vector.load %arg8[%c0_51, %c9] : memref<8x12xf32, #tpu.memory_space<vmem>>, vector<8x1xf32>
      tpu.vector_store %arg8[%c0_51, %c9], %205 {strides = array<i32>} : memref<8x12xf32, #tpu.memory_space<vmem>>, vector<8x1xf32>,
      %c0_52 = arith.constant 0 : index
      %c10 = arith.constant 10 : index
      %232 = vector.load %arg8[%c0_52, %c10] : memref<8x12xf32, #tpu.memory_space<vmem>>, vector<8x1xf32>
      tpu.vector_store %arg8[%c0_52, %c10], %213 {strides = array<i32>} : memref<8x12xf32, #tpu.memory_space<vmem>>, vector<8x1xf32>,
      %c0_53 = arith.constant 0 : index
      %c11 = arith.constant 11 : index
      %233 = vector.load %arg8[%c0_53, %c11] : memref<8x12xf32, #tpu.memory_space<vmem>>, vector<8x1xf32>
      tpu.vector_store %arg8[%c0_53, %c11], %221 {strides = array<i32>} : memref<8x12xf32, #tpu.memory_space<vmem>>, vector<8x1xf32>,
      %cst_54 = arith.constant 0.000000e+00 : f32
      %234 = vector.broadcast %cst_54 : f32 to vector<8x128xf32>
      %c0_55 = arith.constant 0 : index
      %c0_56 = arith.constant 0 : index
      %235 = vector.load %arg7[%c0_55, %c0_56] : memref<8x128xf32, #tpu.memory_space<vmem>>, vector<8x128xf32>
      tpu.vector_store %arg7[%c0_55, %c0_56], %234 {strides = array<i32>} : memref<8x128xf32, #tpu.memory_space<vmem>>, vector<8x128xf32>,
    } else {
    }
    %c0 = arith.constant 0 : index
    %c0_1 = arith.constant 0 : index
    %3 = vector.load %arg8[%c0, %c0_1] : memref<8x12xf32, #tpu.memory_space<vmem>>, vector<8x12xf32>
    %4 = vector.extract_strided_slice %3 {offsets = [0, 0], sizes = [8, 1], strides = [1, 1]} : vector<8x12xf32> to vector<8x1xf32>
    %5 = vector.extract_strided_slice %3 {offsets = [0, 1], sizes = [8, 1], strides = [1, 1]} : vector<8x12xf32> to vector<8x1xf32>
    %6 = vector.extract_strided_slice %3 {offsets = [0, 2], sizes = [8, 1], strides = [1, 1]} : vector<8x12xf32> to vector<8x1xf32>
    %7 = vector.extract_strided_slice %3 {offsets = [0, 3], sizes = [8, 1], strides = [1, 1]} : vector<8x12xf32> to vector<8x1xf32>
    %8 = vector.extract_strided_slice %3 {offsets = [0, 4], sizes = [8, 1], strides = [1, 1]} : vector<8x12xf32> to vector<8x1xf32>
    %9 = vector.extract_strided_slice %3 {offsets = [0, 5], sizes = [8, 1], strides = [1, 1]} : vector<8x12xf32> to vector<8x1xf32>
    %10 = vector.extract_strided_slice %3 {offsets = [0, 6], sizes = [8, 1], strides = [1, 1]} : vector<8x12xf32> to vector<8x1xf32>
    %11 = vector.extract_strided_slice %3 {offsets = [0, 7], sizes = [8, 1], strides = [1, 1]} : vector<8x12xf32> to vector<8x1xf32>
    %12 = vector.extract_strided_slice %3 {offsets = [0, 8], sizes = [8, 1], strides = [1, 1]} : vector<8x12xf32> to vector<8x1xf32>
    %13 = vector.extract_strided_slice %3 {offsets = [0, 9], sizes = [8, 1], strides = [1, 1]} : vector<8x12xf32> to vector<8x1xf32>
    %14 = vector.extract_strided_slice %3 {offsets = [0, 10], sizes = [8, 1], strides = [1, 1]} : vector<8x12xf32> to vector<8x1xf32>
    %15 = vector.extract_strided_slice %3 {offsets = [0, 11], sizes = [8, 1], strides = [1, 1]} : vector<8x12xf32> to vector<8x1xf32>
    %c0_2 = arith.constant 0 : index
    %c0_3 = arith.constant 0 : index
    %16 = vector.load %arg5[%c0_2, %c0_3] : memref<8x256xf32, #tpu.memory_space<vmem>>, vector<1x256xf32>
    %c1 = arith.constant 1 : index
    %c0_4 = arith.constant 0 : index
    %17 = vector.load %arg5[%c1, %c0_4] : memref<8x256xf32, #tpu.memory_space<vmem>>, vector<1x256xf32>
    %c2 = arith.constant 2 : index
    %c0_5 = arith.constant 0 : index
    %18 = vector.load %arg5[%c2, %c0_5] : memref<8x256xf32, #tpu.memory_space<vmem>>, vector<1x256xf32>
    %c3 = arith.constant 3 : index
    %c0_6 = arith.constant 0 : index
    %19 = vector.load %arg5[%c3, %c0_6] : memref<8x256xf32, #tpu.memory_space<vmem>>, vector<1x256xf32>
    %c4 = arith.constant 4 : index
    %c0_7 = arith.constant 0 : index
    %20 = vector.load %arg5[%c4, %c0_7] : memref<8x256xf32, #tpu.memory_space<vmem>>, vector<1x256xf32>
    %21 = vector.broadcast %4 : vector<8x1xf32> to vector<8x256xf32>
    %22 = vector.broadcast %16 : vector<1x256xf32> to vector<8x256xf32>
    %23 = arith.mulf %21, %22 : vector<8x256xf32>
    %24 = vector.broadcast %5 : vector<8x1xf32> to vector<8x256xf32>
    %25 = vector.broadcast %17 : vector<1x256xf32> to vector<8x256xf32>
    %26 = arith.mulf %24, %25 : vector<8x256xf32>
    %27 = arith.addf %23, %26 : vector<8x256xf32>
    %28 = vector.broadcast %6 : vector<8x1xf32> to vector<8x256xf32>
    %29 = vector.broadcast %18 : vector<1x256xf32> to vector<8x256xf32>
    %30 = arith.mulf %28, %29 : vector<8x256xf32>
    %31 = arith.addf %27, %30 : vector<8x256xf32>
    %32 = vector.broadcast %7 : vector<8x1xf32> to vector<8x256xf32>
    %33 = arith.addf %31, %32 : vector<8x256xf32>
    %34 = vector.broadcast %8 : vector<8x1xf32> to vector<8x256xf32>
    %35 = vector.broadcast %16 : vector<1x256xf32> to vector<8x256xf32>
    %36 = arith.mulf %34, %35 : vector<8x256xf32>
    %37 = vector.broadcast %9 : vector<8x1xf32> to vector<8x256xf32>
    %38 = vector.broadcast %17 : vector<1x256xf32> to vector<8x256xf32>
    %39 = arith.mulf %37, %38 : vector<8x256xf32>
    %40 = arith.addf %36, %39 : vector<8x256xf32>
    %41 = vector.broadcast %10 : vector<8x1xf32> to vector<8x256xf32>
    %42 = vector.broadcast %18 : vector<1x256xf32> to vector<8x256xf32>
    %43 = arith.mulf %41, %42 : vector<8x256xf32>
    %44 = arith.addf %40, %43 : vector<8x256xf32>
    %45 = vector.broadcast %11 : vector<8x1xf32> to vector<8x256xf32>
    %46 = arith.addf %44, %45 : vector<8x256xf32>
    %47 = vector.broadcast %12 : vector<8x1xf32> to vector<8x256xf32>
    %48 = vector.broadcast %16 : vector<1x256xf32> to vector<8x256xf32>
    %49 = arith.mulf %47, %48 : vector<8x256xf32>
    %50 = vector.broadcast %13 : vector<8x1xf32> to vector<8x256xf32>
    %51 = vector.broadcast %17 : vector<1x256xf32> to vector<8x256xf32>
    %52 = arith.mulf %50, %51 : vector<8x256xf32>
    %53 = arith.addf %49, %52 : vector<8x256xf32>
    %54 = vector.broadcast %14 : vector<8x1xf32> to vector<8x256xf32>
    %55 = vector.broadcast %18 : vector<1x256xf32> to vector<8x256xf32>
    %56 = arith.mulf %54, %55 : vector<8x256xf32>
    %57 = arith.addf %53, %56 : vector<8x256xf32>
    %58 = vector.broadcast %15 : vector<8x1xf32> to vector<8x256xf32>
    %59 = arith.addf %57, %58 : vector<8x256xf32>
    %60 = tpu.reciprocal %59 {approx = true} : vector<8x256xf32> -> vector<8x256xf32>
    %61 = arith.mulf %33, %60 : vector<8x256xf32>
    %62 = vector.broadcast %19 : vector<1x256xf32> to vector<8x256xf32>
    %63 = arith.subf %62, %61 : vector<8x256xf32>
    %64 = arith.mulf %46, %60 : vector<8x256xf32>
    %65 = vector.broadcast %20 : vector<1x256xf32> to vector<8x256xf32>
    %66 = arith.subf %65, %64 : vector<8x256xf32>
    %67 = arith.mulf %63, %63 : vector<8x256xf32>
    %68 = arith.mulf %66, %66 : vector<8x256xf32>
    %69 = arith.addf %67, %68 : vector<8x256xf32>
    %70 = math.sqrt %69 : vector<8x256xf32>
    %c0_i32_8 = arith.constant 0 : i32
    %71 = arith.cmpi ne, %arg1, %c0_i32_8 : i32
    %72 = arith.extui %71 : i1 to i32
    %c0_i32_9 = arith.constant 0 : i32
    %73 = arith.cmpi ne, %72, %c0_i32_9 : i32
    scf.if %73 {
      %c0_12 = arith.constant 0 : index
      %c0_13 = arith.constant 0 : index
      %77 = vector.load %arg7[%c0_12, %c0_13] : memref<8x128xf32, #tpu.memory_space<vmem>>, vector<8x128xf32>
      %78 = vector.extract_strided_slice %70 {offsets = [0, 0], sizes = [8, 128], strides = [1, 1]} : vector<8x256xf32> to vector<8x128xf32>
      %79 = vector.extract_strided_slice %70 {offsets = [0, 128], sizes = [8, 128], strides = [1, 1]} : vector<8x256xf32> to vector<8x128xf32>
      %80 = arith.addf %78, %79 : vector<8x128xf32>
      %81 = arith.addf %77, %80 : vector<8x128xf32>
      %c0_14 = arith.constant 0 : index
      %c0_15 = arith.constant 0 : index
      %82 = vector.load %arg7[%c0_14, %c0_15] : memref<8x128xf32, #tpu.memory_space<vmem>>, vector<8x128xf32>
      tpu.vector_store %arg7[%c0_14, %c0_15], %81 {strides = array<i32>} : memref<8x128xf32, #tpu.memory_space<vmem>>, vector<8x128xf32>,
    } else {
    }
    %c0_i32_10 = arith.constant 0 : i32
    %74 = arith.cmpi eq, %arg1, %c0_i32_10 : i32
    %75 = arith.extui %74 : i1 to i32
    %c0_i32_11 = arith.constant 0 : i32
    %76 = arith.cmpi ne, %75, %c0_i32_11 : i32
    scf.if %76 {
      %c5 = arith.constant 5 : index
      %c0_12 = arith.constant 0 : index
      %77 = vector.load %arg5[%c5, %c0_12] : memref<8x256xf32, #tpu.memory_space<vmem>>, vector<1x256xf32>
      %c0_13 = arith.constant 0 : index
      %c0_14 = arith.constant 0 : index
      %78 = vector.load %arg7[%c0_13, %c0_14] : memref<8x128xf32, #tpu.memory_space<vmem>>, vector<8x128xf32>
      %cst = arith.constant 0.000000e+00 : f32
      %79 = vector.broadcast %cst : f32 to vector<1x256xf32>
      %80 = arith.cmpf one, %77, %79 : vector<1x256xf32>
      %cst_15 = arith.constant 0.000000e+00 : f32
      %81 = vector.shape_cast %80 : vector<1x256xi1> to vector<1x256xi1>
      %82 = vector.broadcast %81 : vector<1x256xi1> to vector<8x256xi1>
      %83 = vector.broadcast %cst_15 : f32 to vector<8x256xf32>
      %84 = arith.select %82, %70, %83 : vector<8x256xi1>, vector<8x256xf32>
      %85 = vector.extract_strided_slice %84 {offsets = [0, 0], sizes = [8, 128], strides = [1, 1]} : vector<8x256xf32> to vector<8x128xf32>
      %86 = vector.extract_strided_slice %84 {offsets = [0, 128], sizes = [8, 128], strides = [1, 1]} : vector<8x256xf32> to vector<8x128xf32>
      %87 = arith.addf %85, %86 : vector<8x128xf32>
      %88 = arith.addf %78, %87 : vector<8x128xf32>
      %c0_16 = arith.constant 0 : index
      %c0_17 = arith.constant 0 : index
      %89 = vector.load %arg7[%c0_16, %c0_17] : memref<8x128xf32, #tpu.memory_space<vmem>>, vector<8x128xf32>
      tpu.vector_store %arg7[%c0_16, %c0_17], %88 {strides = array<i32>} : memref<8x128xf32, #tpu.memory_space<vmem>>, vector<8x128xf32>,
    } else {
    }
    return
  }
  func.func @transform_0(%arg0: i32, %arg1: i32) -> (i32, i32) {
    %c0_i32 = arith.constant 0 : i32
    %c0_i32_0 = arith.constant 0 : i32
    %c0_i32_1 = arith.constant 0 : i32
    return %c0_i32, %c0_i32_0 : i32, i32
  }
  func.func @transform_1(%arg0: i32, %arg1: i32) -> (i32, i32) {
    %c0_i32 = arith.constant 0 : i32
    %c0_i32_0 = arith.constant 0 : i32
    return %arg0, %c0_i32 : i32, i32
  }
  func.func @transform_2(%arg0: i32, %arg1: i32) -> (i32, i32) {
    %c0_i32 = arith.constant 0 : i32
    %c0_i32_0 = arith.constant 0 : i32
    return %arg0, %c0_i32 : i32, i32
  }
  func.func @transform_3(%arg0: i32, %arg1: i32) -> (i32, i32) {
    %c0_i32 = arith.constant 0 : i32
    %c0_i32_0 = arith.constant 0 : i32
    return %c0_i32, %arg1 : i32, i32
  }
  func.func @transform_4(%arg0: i32, %arg1: i32) -> (i32, i32) {
    %c0_i32 = arith.constant 0 : i32
    %c0_i32_0 = arith.constant 0 : i32
    return %arg0, %c0_i32 : i32, i32
  }
  func.func @transform_5(%arg0: i32, %arg1: i32) -> (i32, i32) {
    %c0_i32 = arith.constant 0 : i32
    %c0_i32_0 = arith.constant 0 : i32
    return %arg0, %c0_i32 : i32, i32
  }
}

</mosaic_0001>

<bundles_post_ra>
// kernel: forward.1
= control target key start
LH: loop header
LB: loop body
LE: loop exit
PB: predicated region body
PF: predicated region fallthrough
CT: control target
= control target key end

     0   :  { %11 = vsyncpa [#allocation5], 0  ;;  %s1065_s0 = inlined_call_operand.vmem [shape: f32[3,3], index: 0, kind: input, shape index: {}]   ;;  %s1066_s1 = inlined_call_operand.vmem [shape: f32[8,6], index: 1, kind: input, shape index: {}]   ;;  %s1067_s2 = inlined_call_operand.vmem [shape: f32[8,6], index: 2, kind: input, shape index: {}]   ;;  %s1068_s3 = inlined_call_operand.vmem [shape: f32[8,256], index: 3, kind: input, shape index: {}]   ;;  %s1069_s4 = inlined_call_operand.hbm [shape: f32[8,6], index: 4, kind: output, shape index: {0}]   ;;  %s1070_s5 = inlined_call_operand.vmem [shape: f32[8,128], index: 5, kind: output, shape index: {1}]  }
   0x1   :  { %12 = vsyncpa [#allocation4], 0  ;;  %s19_s20 = sshll.u32 %s1065_s0, 4  ;;  %s20_s20 = int_to_ptr.vmem [resolvable:$true] %s19_s20 }
   0x2   :  { %s804_s21 = scalar_lea.vmem %s20_s20, 64  ;;  %p809_p1 = scmp.lt.s32.totalorder %s20_s20, %s20_s20 }
   0x3   :  { %p805_p0 = scmp.ne.s32.totalorder %s20_s20, %s804_s21  ;;  %p810_p2 = scmp.lt.s32.totalorder %s804_s21, %s804_s21 }
   0x5   :  { %p811_p3 = por %p810_p2, %p809_p1 }
   0x7   :  { %p812_p4 = pnand %p811_p3, %p805_p0 }
   0x9   :  { %815 = shalt.err (!%p812_p4)
}
   0xa   :  { %s842_s22 = smov [#allocation3]  }
   0xb   :  { %22 = dma.vmem_to_smem %s20_s20, 64, %s842_s22, [#allocation5]  }
   0xc   :  { %838 = dma.done.wait [#allocation5], 64  }
   0xd   :  { %839 = vsyncadd [#allocation5], 4294967232 }
   0xe   :  { %32 = sfence }
   0xf   :  { %v37_v0 = vld [vmem:[%s1066_s1] sm:$0xff]  ;;  %s734_s0 = sld [smem:[#allocation3 + $0x81]]  ;;  %s735_s27 = sld [smem:[#allocation3 + $0x82]]  ;;  %v845_v18 = vmov 683565275  }
  0x10   :  { %v38_v1 = vld [vmem:[%s1067_s2] sm:$0xff]  ;;  %s843_s1 = smov 127   ;;  %s844_s2 = smov 126   ;;  %v846_v20 = vmov 2475754826  }
  0x11   :  { %v911_v2 = vadd.f32 %v38_v1, %v37_v0  ;;  %v847_v22 = vmov 2131351028   ;;  %v848_v24 = vmov 2102212464   ;;  %v849_v26 = vmov 920167782  }
  0x12   :  { %v850_v33 = vmov 1326507024   ;;  %s731_s28 = sld [smem:[#allocation3 + $0x1]]  ;;  %s732_s29 = sld [smem:[#allocation3 + $0x2]] }
  0x13   :  { %v45_v3 = vand.u32 2139095040, %v911_v2  ;;  %v42_v6 = vand.u32 2147483647, %v911_v2  ;;  %vm44_vm7 = vcmp.lt.s32.totalorder %v911_v2, 0  ;;  %vm134_vm15 = vweird.f32 %v911_v2  ;;  %s737_s30 = sld [smem:[#allocation3 + $0x101]]  ;;  %s282_s6 = sld [smem:[#allocation3]] }
  0x14   :  { %s733_s7 = sld [smem:[#allocation3 + $0x80]]  ;;  %s738_s8 = sld [smem:[#allocation3 + $0x102]] }
  0x15   :  { %v46_v4 = vshrl.u32 %v45_v3, 23  ;;  %v914_v5 = vstv %s734_s0  ;;  %v919_v8 = vstv %s735_s27  ;;  %v49_v12 = vand.u32 8388607, %v42_v6  ;;  %s736_s9 = sld [smem:[#allocation3 + $0x100]]  ;;  %s851_s10 = smov 3  }
  0x16   :  { %v365_v7 = vmul.f32 %v914_v5, %v911_v2  ;;  %v371_v10 = vmul.f32 %v919_v8, %v911_v2  ;;  %vm43_vm8 = vcmp.le.f32.partialorder %v42_v6, 0.7853982  ;;  %s852_s11 = smov 7   ;;  %s853_s12 = smov 2  }
  0x17   :  { %v723_v9 = vadd.s32 4294967169, %v46_v4  ;;  %v50_v15 = vor.u32 8388608, %v49_v12  ;;  %s854_s13 = smov 125   ;;  %s855_s14 = smov 1  }
  0x18   :  { %367 = vrot.lane.b32.xlu1 %v365_v7, %s843_s1  ;;  %s858_s15 = smov 6   ;;  %s859_s16 = smov 11  }
  0x19   :  { %v52_v11 = vadd.s32 1, %v723_v9  ;;  %v90_v35 = vshll.u32 %v50_v15, 8  ;;  %s860_s17 = smov 5   ;;  %s871_s18 = smov [#allocation6]  }
  0x1a   :  { %s710_s19 = sshll.u32 %s871_s18, 4  ;;  %s711_s19 = int_to_ptr.vmem [resolvable:$true] %s710_s19 }
  0x1b   :  { %vm53_vm0 = vcmp.gt.s32.totalorder %v52_v11, 0  ;;  %s816_s20 = scalar_lea.vmem %s711_s19, 128  ;;  %p821_p6 = scmp.lt.s32.totalorder %s711_s19, %s711_s19 }
  0x1c   :  { %v54_v13 = vsel %vm53_vm0, %v52_v11, 0  ;;  %373 = vrot.lane.b32.xlu1 %v371_v10, %s844_s2  ;;  %vm424_vm0 = vcmask 7168   ;;  %p817_p5 = scmp.ne.s32.totalorder %s711_s19, %s816_s20  ;;  %p822_p7 = scmp.lt.s32.totalorder %s816_s20, %s816_s20 }
  0x1d   :  { %v56_v14 = vand.u32 31, %v54_v13  ;;  %v55_v16 = vshrl.u32 %v54_v13, 5 }
  0x1e   :  { %p823_p8 = por %p822_p7, %p821_p6 }
  0x1f   :  { %v57_v17 = vsub.s32 32, %v56_v14  ;;  %v59_v19 = vshll.u32 %v845_v18, %v56_v14  ;;  %v62_v21 = vshll.u32 %v846_v20, %v56_v14  ;;  %v65_v23 = vshll.u32 %v847_v22, %v56_v14 }
  0x20   :  { %v68_v25 = vshll.u32 %v848_v24, %v56_v14  ;;  %v71_v27 = vshll.u32 %v849_v26, %v56_v14  ;;  %vm74_vm1 = vcmp.lt.s32.totalorder %v55_v16, 1  ;;  %vm77_vm2 = vcmp.lt.s32.totalorder %v55_v16, 4  ;;  %p824_p9 = pnand %p823_p8, %p817_p5 }
  0x21   :  { %v58_v28 = vshrl.u32 %v845_v18, %v57_v17  ;;  %v60_v29 = vshrl.u32 %v846_v20, %v57_v17  ;;  %v63_v30 = vshrl.u32 %v847_v22, %v57_v17  ;;  %v66_v31 = vshrl.u32 %v848_v24, %v57_v17 }
  0x22   :  { %v69_v32 = vshrl.u32 %v849_v26, %v57_v17  ;;  %v72_v34 = vshrl.u32 %v850_v33, %v57_v17  ;;  %vm75_vm3 = vcmp.lt.s32.totalorder %v55_v16, 2  ;;  %vm76_vm4 = vcmp.lt.s32.totalorder %v55_v16, 3 }
  0x23   :  { %v61_v36 = vor.u32 %v60_v29, %v59_v19  ;;  %v64_v37 = vor.u32 %v63_v30, %v62_v21  ;;  %v67_v38 = vor.u32 %v66_v31, %v65_v23 }
  0x24   :  { %v70_v39 = vor.u32 %v69_v32, %v68_v25  ;;  %v73_v40 = vor.u32 %v72_v34, %v71_v27 }
  0x25   :  { %v78_v41 = vsel %vm74_vm1, %v58_v28, %v61_v36  ;;  %v79_v42 = vsel %vm77_vm2, %v67_v38, 2102212464  ;;  %v82_v43 = vsel %vm74_vm1, %v61_v36, %v64_v37  ;;  %v86_v44 = vsel %vm74_vm1, %v64_v37, %v67_v38 }
  0x26   :  { %v80_v45 = vsel %vm76_vm4, %v64_v37, %v79_v42  ;;  %v83_v46 = vsel %vm77_vm2, %v70_v39, 920167782  ;;  %v87_v47 = vsel %vm77_vm2, %v73_v40, 1326507024  ;;  %v947_v42 = vstv %s731_s28 }
  0x27   :  { %v84_v48 = vsel %vm76_vm4, %v67_v38, %v83_v46  ;;  %v88_v49 = vsel %vm76_vm4, %v70_v39, %v87_v47  ;;  %v81_v50 = vsel %vm75_vm3, %v78_v41, %v80_v45  ;;  %vm430_vm1 = vcmask 15368  }
  0x28   :  { %v85_v51 = vsel %vm75_vm3, %v82_v43, %v84_v48  ;;  %v89_v52 = vsel %vm75_vm3, %v86_v44, %v88_v49  ;;  %v97_v57 = vmul.u32 %v90_v35, %v81_v50  ;;  %v296_v43 = vstv %s732_s29 }
  0x29   :  { %v927_v53 = vmul.u32.u64.low %v90_v35, %v89_v52  ;;  %v928_v54 = vmul.u32.u64.high %v90_v35, %v89_v52, %v927_v53  ;;  %v930_v55 = vmul.u32.u64.low %v90_v35, %v85_v51  ;;  %v931_v56 = vmul.u32.u64.high %v90_v35, %v85_v51, %v930_v55 }
  0x2a   :  { %v322_v44 = vmul.f32 %v947_v42, %v911_v2  ;;  %v328_v46 = vmul.f32 %v296_v43, %v911_v2  ;;  %vm436_vm2 = vcmask 23568   ;;  %vm442_vm3 = vcmask 31768  }
  0x2b   :  { %vm99_vm5 = vc.u32 %v928_v54, %v930_v55  ;;  %v100_v58 = vadd.s32 1, %v931_v56  ;;  %v98_v9 = vadd.s32 %v930_v55, %v928_v54  ;;  %vm448_vm4 = vcmask 39968  }
  0x2d   :  { %v101_v59 = vsel %vm99_vm5, %v100_v58, %v931_v56  ;;  %v379_v56 = vstv %s737_s30  ;;  %vm454_vm5 = vcmask 48168  }
  0x2e   :  { %v102_v60 = vadd.s32 %v101_v59, %v97_v57 }
  0x30   :  { %v103_v61 = vadd.s32 536870912, %v102_v60 }
  0x32   :  { %v104_v62 = vshrl.u32 %v103_v61, 30 }
  0x34   :  { %v105_v63 = vshll.u32 %v104_v62, 30  ;;  %v128_v21 = vsub.s32 4, %v104_v62 }
  0x36   :  { %v106_v0 = vsub.s32 %v102_v60, %v105_v63  ;;  %v129_v24 = vsel %vm44_vm7, %v128_v21, %v104_v62 }
  0x37   :  { %v131_v27 = vsel %vm43_vm8, 0, %v129_v24  ;;  %v976_v24 = vstv %s736_s9 }
  0x38   :  { %v108_v1 = vsub.s32 0, %v106_v0  ;;  %v238_v28 = vadd.s32 3, %v131_v27  ;;  %v135_v30 = vand.u32 3, %v131_v27 }
  0x3a   :  { %v724_v3 = vmin.u32 %v108_v1, %v106_v0  ;;  %v239_v29 = vand.u32 3, %v238_v28  ;;  %vm140_vm10 = vcmp.eq.s32.totalorder %v135_v30, 2  ;;  %vm137_vm12 = vcmp.eq.s32.totalorder %v135_v30, 0 }
  0x3b   :  { %vm136_vm14 = vcmp.lt.s32.totalorder %v135_v30, 2  ;;  %v408_v1 = vmul.f32 %v379_v56, %v911_v2 }
  0x3c   :  { %v110_v4 = vclz %v724_v3  ;;  %vm244_vm9 = vcmp.eq.s32.totalorder %v239_v29, 2  ;;  %vm241_vm11 = vcmp.eq.s32.totalorder %v239_v29, 0  ;;  %vm240_vm13 = vcmp.lt.s32.totalorder %v239_v29, 2 }
  0x3e   :  { %v725_v7 = vadd.s32 4294967294, %v110_v4 }
  0x40   :  { %vm726_vm6 = vcmp.lt.s32.totalorder %v725_v7, 0 }
  0x41   :  { %v113_v10 = vsel %vm726_vm6, 0, %v725_v7  ;;  %vm460_vm6 = vcmask 56368  }
  0x42   :  { %v114_v11 = vsub.s32 32, %v113_v10  ;;  %v115_v12 = vshll.u32 %v106_v0, %v113_v10  ;;  %v118_v13 = vsub.s32 4294967266, %v113_v10 }
  0x44   :  { %v116_v14 = vshrl.u32 %v98_v9, %v114_v11  ;;  %v119_v15 = vadd.s32 127, %v118_v13 }
  0x46   :  { %v117_v16 = vor.u32 %v116_v14, %v115_v12  ;;  %v120_v17 = vshll.u32 %v119_v15, 23  ;;  %v291_v15 = vstv %s282_s6 }
  0x48   :  { %v121_v18 = vor.u32 4788187, %v120_v17  ;;  %v124_v19 = vcvt.s32.f32 %v117_v16  ;;  %v334_v17 = vstv %s733_s7 }
  0x4a   :  { %v122_v20 = vand.u32 2147483647, %v121_v18 }
  0x4c   :  { %v125_v22 = vmul.f32 %v124_v19, %v122_v20  ;;  %v321_v19 = vmul.f32 %v291_v15, %v911_v2  ;;  %v382_v20 = vstv %s738_s8 }
  0x4e   :  { %v126_v23 = vxor.u32 2147483648, %v125_v22 }
  0x50   :  { %v127_v25 = vsel %vm44_vm7, %v126_v23, %v125_v22  ;;  %vm466_vm7 = vcmask 64568  }
  0x51   :  { %v130_v26 = vsel %vm43_vm8, %v911_v2, %v127_v25  ;;  %vm472_vm8 = vcmask 72768  }
  0x52   :  { %792 = vcosq.f32 %v130_v26 }
  0x53   :  { %794 = vsinq.f32 %v130_v26 }
  0x5c   :  { %v793_v31 = vpop.eup %792 }
  0x5d   :  { %v795_v32 = vpop.eup %794  ;;  %v141_v33 = vxor.u32 2147483648, %v793_v31 }
  0x5e   :  { %v138_v6 = vxor.u32 2147483648, %v795_v32 }
  0x5f   :  { %v246_v34 = vsel %vm244_vm9, %v141_v33, %v795_v32  ;;  %v142_v35 = vsel %vm140_vm10, %v141_v33, %v795_v32  ;;  %vm478_vm9 = vcmask 80968   ;;  %vm484_vm10 = vcmask 89168  }
  0x60   :  { %v243_v36 = vsel %vm241_vm11, %v793_v31, %v138_v6  ;;  %v139_v37 = vsel %vm137_vm12, %v793_v31, %v138_v6  ;;  %vm490_vm11 = vcmask 97368   ;;  %vm40_vm12 = vcmask 48128  }
  0x61   :  { %v247_v38 = vsel %vm240_vm13, %v243_v36, %v246_v34  ;;  %v143_v39 = vsel %vm136_vm14, %v139_v37, %v142_v35  ;;  %41 = vst.msk [vmem:[#allocation6] sm:$0xff] %vm40_vm12, %v911_v2 }
  0x62   :  { %v942_v40 = vsel %vm134_vm15, nan, %v247_v38  ;;  %v144_v41 = vsel %vm134_vm15, nan, %v143_v39 }
  0x63   :  { %255 = vrot.lane.b32.xlu0 %v942_v40, %s843_s1  ;;  %250 = vrot.lane.b32.xlu1 %v144_v41, %s844_s2  ;;  %v306_v45 = vmul.f32 %v296_v43, %v942_v40  ;;  %v349_v47 = vmul.f32 %v919_v8, %v942_v40  ;;  %v280_v50 = vsub.f32 0.0, %v144_v41  ;;  %v264_v63 = vsub.f32 0.0, %v942_v40 }
  0x64   :  { %v392_v33 = vmul.f32 %v382_v20, %v942_v40 }
  0x67   :  { %259 = vrot.lane.b32.xlu1 %v942_v40, %s844_s2  ;;  %265 = vrot.lane.b32.xlu0 %v144_v41, %s843_s1 }
  0x6b   :  { %324 = vrot.lane.b32.xlu0 %v322_v44, %s843_s1  ;;  %308 = vrot.lane.b32.xlu1 %v306_v45, %s843_s1 }
  0x6f   :  { %330 = vrot.lane.b32.xlu0 %v328_v46, %s844_s2 }
  0x73   :  { %351 = vrot.lane.b32.xlu0 %v349_v47, %s843_s1 }
  0x8a   :  { %v962_v48 = vpop.permute.xlu1 %367 }
  0x8e   :  { %v964_v49 = vpop.permute.xlu1 %373 }
  0xd5   :  { %v256_v51 = vpop.permute.xlu0 %255  ;;  %v251_v52 = vpop.permute.xlu1 %250 }
  0xd6   :  { %v258_v53 = vmul.f32 %v256_v51, %v942_v40  ;;  %v273_v54 = vmul.f32 %v256_v51, %v144_v41  ;;  %v281_v55 = vmul.f32 %v280_v50, %v256_v51  ;;  %v253_v57 = vmul.f32 %v251_v52, %v144_v41 }
  0xd7   :  { %v272_v59 = vmul.f32 %v251_v52, %v942_v40  ;;  %v414_v50 = vmul.f32 %v382_v20, %v911_v2 }
  0xd8   :  { %v270_v58 = vmul.f32 %v258_v53, %v251_v52  ;;  %v278_v60 = vmul.f32 %v273_v54, %v251_v52  ;;  %v297_v61 = vmul.f32 %v296_v43, %v281_v55  ;;  %v340_v29 = vmul.f32 %v919_v8, %v281_v55 }
  0xd9   :  { %v260_v62 = vpop.permute.xlu1 %259  ;;  %v266_v0 = vpop.permute.xlu0 %265 }
  0xda   :  { %v262_v3 = vmul.f32 %v260_v62, %v258_v53  ;;  %v269_v4 = vmul.f32 %v260_v62, %v144_v41  ;;  %v274_v7 = vmul.f32 %v273_v54, %v260_v62  ;;  %v277_v9 = vmul.f32 %v260_v62, %v942_v40  ;;  %299 = vrot.lane.b32.xlu0 %v297_v61, %s843_s1 }
  0xdb   :  { %v276_v10 = vmul.f32 %v266_v0, %v144_v41  ;;  %v268_v18 = vmul.f32 %v266_v0, %v264_v63  ;;  %v383_v41 = vmul.f32 %v382_v20, %v281_v55  ;;  %v364_v40 = vmul.f32 %v334_v17, %v911_v2 }
  0xdc   :  { %v263_v11 = vsub.f32 %v253_v57, %v262_v3  ;;  %v271_v12 = vadd.f32 %v270_v58, %v269_v4  ;;  %v275_v13 = vadd.f32 %v274_v7, %v272_v59  ;;  %v279_v14 = vsub.f32 %v277_v9, %v278_v60 }
  0xdd   :  { %v315_v16 = vmul.f32 %v296_v43, %v276_v10  ;;  %v358_v25 = vmul.f32 %v919_v8, %v276_v10  ;;  %v389_v35 = vmul.f32 %v976_v24, %v268_v18  ;;  %v325_v36 = vpop.permute.xlu0 %324  ;;  %v390_v38 = vmul.f32 %v379_v56, %v276_v10  ;;  %v309_v60 = vpop.permute.xlu1 %308 }
  0xde   :  { %410 = vrot.lane.b32.xlu0 %v408_v1, %s843_s1  ;;  %v292_v21 = vmul.f32 %v291_v15, %v263_v11  ;;  %v294_v22 = vmul.f32 %v947_v42, %v275_v13  ;;  %v312_v23 = vmul.f32 %v291_v15, %v271_v12  ;;  %v313_v26 = vmul.f32 %v947_v42, %v279_v14 }
  0xdf   :  { %317 = vrot.lane.b32.xlu1 %v315_v16, %s843_s1  ;;  %v335_v27 = vmul.f32 %v334_v17, %v263_v11  ;;  %v337_v28 = vmul.f32 %v914_v5, %v275_v13  ;;  %v355_v31 = vmul.f32 %v334_v17, %v271_v12  ;;  %v356_v32 = vmul.f32 %v914_v5, %v279_v14 }
  0xe0   :  { %v295_v30 = vadd.f32 %v294_v22, %v292_v21  ;;  %v314_v6 = vadd.f32 %v313_v26, %v312_v23  ;;  %v378_v39 = vmul.f32 %v976_v24, %v263_v11  ;;  %v380_v8 = vmul.f32 %v379_v56, %v275_v13 }
  0xe1   :  { %v338_v34 = vadd.f32 %v337_v28, %v335_v27  ;;  %v357_v37 = vadd.f32 %v356_v32, %v355_v31  ;;  %v398_v43 = vmul.f32 %v976_v24, %v271_v12  ;;  %v399_v44 = vmul.f32 %v379_v56, %v279_v14  ;;  %v331_v52 = vpop.permute.xlu0 %330 }
  0xe2   :  { %360 = vrot.lane.b32.xlu0 %v358_v25, %s843_s1  ;;  %v391_v45 = vadd.f32 %v390_v38, %v389_v35  ;;  %v381_v46 = vadd.f32 %v380_v8, %v378_v39  ;;  %v327_v47 = vadd.f32 %v325_v36, %v321_v19  ;;  %v401_v53 = vmul.f32 %v382_v20, %v276_v10 }
  0xe3   :  { %342 = vrot.lane.b32.xlu1 %v340_v29, %s843_s1  ;;  %v400_v51 = vadd.f32 %v399_v44, %v398_v43  ;;  %v370_v54 = vadd.f32 %v962_v48, %v364_v40  ;;  %v303_v56 = vmul.f32 %v291_v15, %v268_v18  ;;  %v304_v57 = vmul.f32 %v947_v42, %v276_v10 }
  0xe4   :  { %v333_v55 = vadd.f32 %v331_v52, %v327_v47  ;;  %v346_v61 = vmul.f32 %v334_v17, %v268_v18  ;;  %v347_v62 = vmul.f32 %v914_v5, %v276_v10  ;;  %v407_v11 = vmul.f32 %v976_v24, %v911_v2 }
  0xe5   :  { %v376_v58 = vadd.f32 %v964_v49, %v370_v54  ;;  %v305_v59 = vadd.f32 %v304_v57, %v303_v56  ;;  %v352_v63 = vpop.permute.xlu0 %351  ;;  %v856_v14 = vmov 9   ;;  %v857_v15 = vmov 8  }
  0xe6   :  { %385 = vrot.lane.b32.xlu0 %v383_v41, %s843_s1  ;;  %v348_v0 = vadd.f32 %v347_v62, %v346_v61  ;;  %779 = vset.pattern.permute.xlu1 %v857_v15  ;;  %v861_v36 = vmov 0   ;;  %v863_v38 = vmov 5   ;;  %v864_v39 = vmov 11  }
  0xe7   :  { %394 = vrot.lane.b32.xlu1 %v392_v33, %s843_s1  ;;  %v311_v48 = vadd.f32 %v309_v60, %v305_v59  ;;  %780 = vset.pattern.permute.xlu0 %v856_v14  ;;  %v865_v8 = vmov 3   ;;  %v866_v41 = vmov 1   ;;  %v867_v43 = vmov 4  }
  0xe8   :  { %v354_v1 = vadd.f32 %v352_v63, %v348_v0  ;;  %v868_v44 = vmov 2  }
  0xea   :  { %416 = vrot.lane.b32.xlu0 %v414_v50, %s844_s2 }
  0xeb   :  { %403 = vrot.lane.b32.xlu1 %v401_v53, %s843_s1 }
  0xee   :  { %439 = vrot.lane.b32.xlu0 %v333_v55, %s851_s10 }
  0xf2   :  { %463 = vrot.lane.b32.xlu0 %v376_v58, %s852_s11 }
  0xf6   :  { %427 = vrot.lane.b32.xlu0 %v311_v48, %s844_s2 }
  0xfa   :  { %451 = vrot.lane.b32.xlu0 %v354_v1, %s853_s12 }
 0x14c   :  { %v300_v42 = vpop.permute.xlu0 %299 }
 0x14d   :  { %v302_v49 = vadd.f32 %v300_v42, %v295_v30 }
 0x14f   :  { %421 = vrot.lane.b32.xlu1 %v302_v49, %s854_s13 }
 0x150   :  { %v411_v3 = vpop.permute.xlu0 %410 }
 0x151   :  { %v318_v4 = vpop.permute.xlu1 %317  ;;  %v413_v18 = vadd.f32 %v411_v3, %v407_v11 }
 0x152   :  { %v320_v7 = vadd.f32 %v318_v4, %v314_v6 }
 0x154   :  { %433 = vrot.lane.b32.xlu1 %v320_v7, %s843_s1  ;;  %v361_v5 = vpop.permute.xlu0 %360 }
 0x155   :  { %v343_v9 = vpop.permute.xlu1 %342  ;;  %v363_v16 = vadd.f32 %v361_v5, %v357_v37  ;;  %v862_v37 = vmov 10  }
 0x156   :  { %v345_v10 = vadd.f32 %v343_v9, %v338_v34 }
 0x158   :  { %445 = vrot.lane.b32.xlu1 %v345_v10, %s855_s14  ;;  %v386_v12 = vpop.permute.xlu0 %385 }
 0x159   :  { %v395_v13 = vpop.permute.xlu1 %394  ;;  %v388_v21 = vadd.f32 %v386_v12, %v381_v46  ;;  %v870_v46 = vmov 7  }
 0x15a   :  { %v397_v17 = vadd.f32 %v395_v13, %v391_v45  ;;  %v869_v45 = vmov 6  }
 0x15c   :  { %475 = vrot.lane.b32.xlu0 %v397_v17, %s858_s15  ;;  %457 = vrot.lane.b32.xlu1 %v363_v16, %s851_s10  ;;  %v417_v19 = vpop.permute.xlu0 %416 }
 0x15d   :  { %v419_v20 = vadd.f32 %v417_v19, %v413_v18  ;;  %v404_v22 = vpop.permute.xlu1 %403 }
 0x15e   :  { %v406_v23 = vadd.f32 %v404_v22, %v400_v51 }
 0x160   :  { %487 = vrot.lane.b32.xlu0 %v419_v20, %s859_s16  ;;  %469 = vrot.lane.b32.xlu1 %v388_v21, %s860_s17  ;;  %v440_v24 = vpop.permute.xlu0 %439 }
 0x164   :  { %481 = vrot.lane.b32.xlu1 %v406_v23, %s852_s11  ;;  %v464_v25 = vpop.permute.xlu0 %463 }
 0x168   :  { %v428_v27 = vpop.permute.xlu0 %427 }
 0x16c   :  { %v452_v30 = vpop.permute.xlu0 %451 }
 0x1c1   :  { %v422_v26 = vpop.permute.xlu1 %421 }
 0x1c2   :  { %425 = vst.msk [vmem:[#allocation2] sm:$0xff] %vm424_vm0, %v422_v26 }
 0x1c3   :  { %431 = vst.msk [vmem:[#allocation2] sm:$0xff] %vm430_vm1, %v428_v27 }
 0x1c6   :  { %v434_v28 = vpop.permute.xlu1 %433 }
 0x1c7   :  { %437 = vst.msk [vmem:[#allocation2] sm:$0xff] %vm436_vm2, %v434_v28 }
 0x1c8   :  { %443 = vst.msk [vmem:[#allocation2] sm:$0xff] %vm442_vm3, %v440_v24 }
 0x1ca   :  { %v446_v29 = vpop.permute.xlu1 %445 }
 0x1cb   :  { %449 = vst.msk [vmem:[#allocation2] sm:$0xff] %vm448_vm4, %v446_v29 }
 0x1cc   :  { %455 = vst.msk [vmem:[#allocation2] sm:$0xff] %vm454_vm5, %v452_v30 }
 0x1ce   :  { %v458_v31 = vpop.permute.xlu1 %457  ;;  %v476_v32 = vpop.permute.xlu0 %475 }
 0x1cf   :  { %461 = vst.msk [vmem:[#allocation2] sm:$0xff] %vm460_vm6, %v458_v31 }
 0x1d0   :  { %467 = vst.msk [vmem:[#allocation2] sm:$0xff] %vm466_vm7, %v464_v25 }
 0x1d2   :  { %v470_v33 = vpop.permute.xlu1 %469  ;;  %v488_v34 = vpop.permute.xlu0 %487 }
 0x1d3   :  { %473 = vst.msk [vmem:[#allocation2] sm:$0xff] %vm472_vm8, %v470_v33 }
 0x1d4   :  { %479 = vst.msk [vmem:[#allocation2] sm:$0xff] %vm478_vm9, %v476_v32 }
 0x1d6   :  { %v482_v6 = vpop.permute.xlu1 %481 }
 0x1d7   :  { %485 = vst.msk [vmem:[#allocation2] sm:$0xff] %vm484_vm10, %v482_v6 }
 0x1d8   :  { %491 = vst.msk [vmem:[#allocation2] sm:$0xff] %vm490_vm11, %v488_v34 }
 0x1df   :  { %v493_v35 = vld [vmem:[#allocation2] sm:$0xff] }
 0x1e0   :  { %600 = vperm.xlu0 %780, %v493_v35   ;;  %594 = vperm.xlu1 %779, %v493_v35  }
 0x1e4   :  { %783 = vset.pattern.permute.xlu0 %v861_v36  ;;  %781 = vset.pattern.permute.xlu1 %v862_v37 }
 0x1e5   :  { %505 = vperm.xlu0 %783, %v493_v35   ;;  %608 = vperm.xlu1 %781, %v493_v35  }
 0x1e9   :  { %786 = vset.pattern.permute.xlu0 %v863_v38  ;;  %782 = vset.pattern.permute.xlu1 %v864_v39 }
 0x1ea   :  { %572 = vperm.xlu0 %786, %v493_v35   ;;  %616 = vperm.xlu1 %782, %v493_v35  }
 0x1ee   :  { %789 = vset.pattern.permute.xlu0 %v865_v8  ;;  %784 = vset.pattern.permute.xlu1 %v866_v41 }
 0x1ef   :  { %560 = vperm.xlu0 %789, %v493_v35   ;;  %522 = vperm.xlu1 %784, %v493_v35  }
 0x1f3   :  { %785 = vset.pattern.permute.xlu1 %v867_v43  ;;  %791 = vset.pattern.permute.xlu0 %v864_v39 }
 0x1f4   :  { %566 = vperm.xlu1 %785, %v493_v35  }
 0x1f8   :  { %787 = vset.pattern.permute.xlu1 %v868_v44 }
 0x1f9   :  { %541 = vperm.xlu1 %787, %v493_v35  }
 0x1fd   :  { %788 = vset.pattern.permute.xlu1 %v869_v45 }
 0x1fe   :  { %580 = vperm.xlu1 %788, %v493_v35  }
 0x202   :  { %790 = vset.pattern.permute.xlu1 %v870_v46 }
 0x203   :  { %588 = vperm.xlu1 %790, %v493_v35  }
 0x204   :  { %827 = shalt.err (!%p824_p9)
}
 0x205   :  { %s828_s23 = scalar_lea.hbm %s1069_s4, 128 }
 0x206   :  { %p829_p10 = scmp.ne.s32.totalorder %s1069_s4, %s828_s23  ;;  %p832_p11 = scmp.lt.u32.totalorder %s828_s23, %s1069_s4 }
 0x208   :  { %p834_p12 = pnand %p832_p11, %p829_p10 }
 0x20a   :  { %837 = shalt.err (!%p834_p12)
}
 0x20b   :  { %713 = dma.vmem_to_hbm [thread:$0]  %s711_s19, 128, %s1069_s4, [#allocation4]   ;;  %v509_v2 = vlaneseq  ;;  %v739_v52 = vld [vmem:[%s1068_s3 + $0x1] ss:$8 sm:$0x3] }
 0x20c   :  { %v494_v53 = vld [vmem:[%s1068_s3] ss:$8 sm:$0x3]  ;;  %v740_v54 = vld [vmem:[%s1068_s3 + $0x2] ss:$8 sm:$0x3] }
 0x20d   :  { %v510_v40 = vshrl.u32 %v509_v2, 7  ;;  %v741_v39 = vld [vmem:[%s1068_s3 + $0x3] ss:$8 sm:$0x3] }
 0x20e   :  { %v742_v43 = vld [vmem:[%s1068_s3 + $0x4] ss:$8 sm:$0x3] }
 0x20f   :  { %v1021_v47 = vsub.s32 0, %v510_v40  ;;  %v1023_v50 = vsub.s32 1, %v510_v40 }
 0x211   :  { %v529_v55 = vrot.slane %v739_v52, %v1021_v47  ;;  %v512_v56 = vrot.slane %v494_v53, %v1021_v47  ;;  %v533_v57 = vrot.slane %v739_v52, %v1023_v50  ;;  %v516_v59 = vrot.slane %v494_v53, %v1023_v50 }
 0x212   :  { %v548_v61 = vrot.slane %v740_v54, %v1021_v47  ;;  %v552_v62 = vrot.slane %v740_v54, %v1023_v50  ;;  %v629_v40 = vrot.slane %v741_v39, %v1021_v47  ;;  %v644_v53 = vrot.slane %v742_v43, %v1021_v47 }
 0x213   :  { %v648_v54 = vrot.slane %v742_v43, %v1023_v50 }
 0x25f   :  { %v595_v51 = vpop.permute.xlu1 %594  ;;  %v601_v58 = vpop.permute.xlu0 %600 }
 0x260   :  { %v603_v48 = vmul.f32 %v601_v58, %v529_v55  ;;  %v597_v63 = vmul.f32 %v595_v51, %v512_v56  ;;  %v604_v0 = vmul.f32 %v601_v58, %v533_v57  ;;  %v598_v1 = vmul.f32 %v595_v51, %v516_v59 }
 0x261   :  { %v633_v51 = vrot.slane %v741_v39, %v1023_v50 }
 0x262   :  { %v605_v4 = vadd.f32 %v603_v48, %v597_v63  ;;  %v606_v7 = vadd.f32 %v604_v0, %v598_v1 }
 0x264   :  { %v609_v60 = vpop.permute.xlu1 %608  ;;  %v506_v11 = vpop.permute.xlu0 %505 }
 0x265   :  { %v611_v42 = vmul.f32 %v609_v60, %v548_v61  ;;  %v612_v3 = vmul.f32 %v609_v60, %v552_v62  ;;  %v519_v18 = vmul.f32 %v512_v56, %v506_v11  ;;  %v520_v19 = vmul.f32 %v516_v59, %v506_v11 }
 0x267   :  { %v613_v5 = vadd.f32 %v611_v42, %v605_v4  ;;  %v614_v9 = vadd.f32 %v612_v3, %v606_v7  ;;  %v743_v42 = vld [vmem:[%s1068_s3 + $0x5] ss:$8 sm:$0x3] }
 0x268   :  { %vm687_vm13 = vcmp.ne.f32.partialorder %v743_v42, 0.0 }
 0x269   :  { %v617_v49 = vpop.permute.xlu1 %616  ;;  %v573_v17 = vpop.permute.xlu0 %572  ;;  %v688_v4 = vsel %vm687_vm13, 1, %v861_v36 }
 0x26a   :  { %v619_v12 = vadd.f32 %v617_v49, %v613_v5  ;;  %v620_v13 = vadd.f32 %v617_v49, %v614_v9  ;;  %v575_v29 = vmul.f32 %v573_v17, %v529_v55  ;;  %v576_v30 = vmul.f32 %v573_v17, %v533_v57 }
 0x26b   :  { %v692_v7 = vrot.slane %v688_v4, %v1021_v47  ;;  %v696_v5 = vrot.slane %v688_v4, %v1023_v50 }
 0x26c   :  { %796 = vrcp.f32 %v619_v12 }
 0x26d   :  { %798 = vrcp.f32 %v620_v13  ;;  %vm1056_vm14 = vcmp.eq.s32.totalorder %v692_v7, 1  ;;  %vm698_vm15 = vcmp.eq.s32.totalorder %v696_v5, 1 }
 0x26e   :  { %v523_v10 = vpop.permute.xlu1 %522  ;;  %v561_v31 = vpop.permute.xlu0 %560 }
 0x26f   :  { %v536_v15 = vmul.f32 %v529_v55, %v523_v10  ;;  %v537_v16 = vmul.f32 %v533_v57, %v523_v10 }
 0x271   :  { %v538_v21 = vadd.f32 %v536_v15, %v519_v18  ;;  %v539_v22 = vadd.f32 %v537_v16, %v520_v19 }
 0x273   :  { %v567_v14 = vpop.permute.xlu1 %566 }
 0x274   :  { %v569_v25 = vmul.f32 %v567_v14, %v512_v56  ;;  %v570_v26 = vmul.f32 %v567_v14, %v516_v59 }
 0x276   :  { %v577_v34 = vadd.f32 %v575_v29, %v569_v25  ;;  %v578_v35 = vadd.f32 %v576_v30, %v570_v26  ;;  %v797_v8 = vpop.eup %796 }
 0x277   :  { %v799_v41 = vpop.eup %798 }
 0x278   :  { %v542_v20 = vpop.permute.xlu1 %541 }
 0x279   :  { %v555_v23 = vmul.f32 %v548_v61, %v542_v20  ;;  %v556_v24 = vmul.f32 %v552_v62, %v542_v20 }
 0x27b   :  { %v557_v27 = vadd.f32 %v555_v23, %v538_v21  ;;  %v558_v28 = vadd.f32 %v556_v24, %v539_v22 }
 0x27d   :  { %v563_v32 = vadd.f32 %v561_v31, %v557_v27  ;;  %v564_v33 = vadd.f32 %v561_v31, %v558_v28  ;;  %v581_v6 = vpop.permute.xlu1 %580 }
 0x27e   :  { %v583_v37 = vmul.f32 %v581_v6, %v548_v61  ;;  %v584_v38 = vmul.f32 %v581_v6, %v552_v62 }
 0x27f   :  { %v623_v46 = vmul.f32 %v797_v8, %v563_v32  ;;  %v624_v2 = vmul.f32 %v799_v41, %v564_v33 }
 0x280   :  { %v585_v44 = vadd.f32 %v583_v37, %v577_v34  ;;  %v586_v45 = vadd.f32 %v584_v38, %v578_v35 }
 0x281   :  { %v636_v57 = vsub.f32 %v629_v40, %v623_v46  ;;  %v637_v58 = vsub.f32 %v633_v51, %v624_v2 }
 0x282   :  { %v589_v52 = vpop.permute.xlu1 %588 }
 0x283   :  { %v591_v55 = vadd.f32 %v589_v52, %v585_v44  ;;  %v592_v56 = vadd.f32 %v589_v52, %v586_v45  ;;  %v653_v48 = vmul.f32 %v636_v57, %v636_v57  ;;  %v654_v63 = vmul.f32 %v637_v58, %v637_v58 }
 0x285   :  { %v638_v59 = vmul.f32 %v797_v8, %v591_v55  ;;  %v639_v60 = vmul.f32 %v799_v41, %v592_v56 }
 0x287   :  { %v651_v61 = vsub.f32 %v644_v53, %v638_v59  ;;  %v652_v62 = vsub.f32 %v648_v54, %v639_v60 }
 0x289   :  { %v655_v0 = vmul.f32 %v651_v61, %v651_v61  ;;  %v656_v1 = vmul.f32 %v652_v62, %v652_v62 }
 0x28b   :  { %v657_v49 = vadd.f32 %v655_v0, %v653_v48  ;;  %v658_v3 = vadd.f32 %v656_v1, %v654_v63 }
 0x28d   :  { %800 = vrsqrt.f32 %v657_v49  ;;  %vm661_vm0 = vcmp.eq.f32.partialorder %v657_v49, inf  ;;  %v664_v13 = vand.u32 2147483648, %v657_v49  ;;  %vm663_vm1 = vcmp.eq.f32.partialorder %v657_v49, 0.0 }
 0x28e   :  { %802 = vrsqrt.f32 %v658_v3  ;;  %vm668_vm2 = vcmp.eq.f32.partialorder %v658_v3, inf  ;;  %v671_v16 = vand.u32 2147483648, %v658_v3  ;;  %vm670_vm3 = vcmp.eq.f32.partialorder %v658_v3, 0.0 }
 0x297   :  { %v801_v9 = vpop.eup %800 }
 0x298   :  { %v803_v10 = vpop.eup %802  ;;  %v660_v12 = vmul.f32 %v801_v9, %v657_v49 }
 0x299   :  { %v667_v14 = vmul.f32 %v803_v10, %v658_v3 }
 0x29a   :  { %v662_v15 = vsel %vm661_vm0, %v657_v49, %v660_v12 }
 0x29b   :  { %v665_v36 = vsel %vm663_vm1, %v664_v13, %v662_v15  ;;  %v669_v17 = vsel %vm668_vm2, %v658_v3, %v667_v14 }
 0x29c   :  { %v672_v47 = vsel %vm670_vm3, %v671_v16, %v669_v17  ;;  %v699_v50 = vsel %vm1056_vm14, %v665_v36, 0.0 }
 0x29d   :  { %v700_v18 = vsel %vm698_vm15, %v672_v47, 0.0 }
 0x29e   :  { %v701_v19 = vadd.f32 %v700_v18, %v699_v50 }
 0x2a0   :  { %703 = vst [vmem:[%s1070_s5] sm:$0xff] %v701_v19 }
 0x2a1   :  { %840 = dma.done.wait [#allocation4], 128  }
 0x2a2   :  { %841 = vsyncadd [#allocation4], 4294967168 }
 0x2a3   :  { %721 = vsyncpa [#allocation4], 1 }
 0x2a4   :  { %722 = vsyncpa [#allocation5], 1 }

</bundles_post_ra>
